<compile_context>
chip_gen: v5e
topology: v5e:2x2
jax: 0.10.0
libtpu: 0.0.40
codegen_flags: <defaults>
</compile_context>

<pallas_src>
import jax
import jax.numpy as jnp
from jax import lax
from jax.experimental import pallas as pl
from jax.experimental.pallas import tpu as pltpu


def cam_kernel(gamma_ref, x_ref, out_ref, att_ref):
    # gamma_ref : (1,) f32 in SMEM      learnable blend scalar
    # x_ref     : (1, C, hw_tile)       one spatial tile of one batch element (VMEM)
    # out_ref   : (1, C, hw_tile)
    # att_ref   : (C, C) f32 VMEM       energy accumulator, then gamma * attention
    phase = pl.program_id(1)
    hw = pl.program_id(2)

    x = x_ref[0]                                         # (C, hw_tile), native dtype

    @pl.when(jnp.logical_and(phase == 0, hw == 0))
    def _init():
        att_ref[...] = jnp.zeros_like(att_ref)
        # Defensive: the phase-0 output window is parked on tile 0 and otherwise
        # never written; seed it with x so any writeback policy flushes valid data.
        out_ref[0] = x

    @pl.when(phase == 0)
    def _accumulate_energy():
        # energy += x_tile @ x_tile^T (contract over the spatial/lane dimension).
        # A@A^T over the lane dim may lower with an XLU transpose; the XLU slot is
        # otherwise idle in phase 0, so it co-issues for free (verified-by-design;
        # revisit only if the bundle dump shows it on the critical path).
        att_ref[...] += lax.dot_general(
            x, x, dimension_numbers=(((1,), (1,)), ((), ())),
            preferred_element_type=jnp.float32)

    @pl.when(jnp.logical_and(phase == 1, hw == 0))
    def _energy_to_attention():
        e = att_ref[...]                                 # (C, C) f32
        e_new = jnp.max(e, axis=-1, keepdims=True) - e
        e_new = e_new - jnp.max(e_new, axis=-1, keepdims=True)   # numerical stability
        p = jnp.exp(e_new)
        inv = pl.reciprocal(jnp.sum(p, axis=-1, keepdims=True), approx=True)  # EUP
        # Fold gamma into the attention matrix once per batch element.
        att_ref[...] = gamma_ref[0] * (p * inv)

    @pl.when(phase == 1)
    def _apply():
        att = att_ref[...]                               # (C, C) f32
        if x.dtype != att.dtype:
            # bf16 inputs: feed the MXU at native rate (cast attention, not x).
            att = att.astype(x.dtype)
        o = lax.dot_general(att, x, dimension_numbers=(((1,), (0,)), ((), ())),
                            preferred_element_type=jnp.float32)  # (C, hw_tile)
        out_ref[0] = o.astype(out_ref.dtype) + x         # residual; exact when gamma==0


def _vmem_capacity_bytes():
    """Physical VMEM per TensorCore (128 MiB on v5e/v6e, 64 MiB on v7x)."""
    try:
        info = pltpu.get_tpu_info()
        cap = getattr(info, "vmem_capacity_bytes", None)
        if cap:
            return int(cap)
    except Exception:
        pass
    return 64 * 1024 * 1024  # conservative fallback (v7x per-core size)


def _pick_hw_tile(hw_pad, c, itemsize, window_budget):
    """Largest multiple of 128 dividing hw_pad whose (C, hw_tile) window fits the
    budget; prefers hw_pad itself (single HBM read of x per batch element)."""
    if c * hw_pad * itemsize <= window_budget:
        return hw_pad
    best = 128
    for t in range(128, hw_pad + 1, 128):
        if hw_pad % t == 0 and c * t * itemsize <= window_budget:
            best = t
    return best


def cam_module(x_nchw, gamma, *, hw_tile=None):
    N, C, H, W = x_nchw.shape
    HW = H * W
    x = x_nchw.reshape(N, C, HW)                         # contiguous reshape: free

    # Pad the spatial axis to a multiple of 128 (lane-dense loads/stores; exact).
    HW_pad = ((HW + 127) // 128) * 128
    if HW_pad != HW:
        x = jnp.pad(x, ((0, 0), (0, 0), (0, HW_pad - HW)))

    itemsize = x.dtype.itemsize
    vmem_cap = _vmem_capacity_bytes()
    vmem_limit = (vmem_cap // 8) * 7                     # 112 MiB v5e/v6e, 56 MiB v7x
    scratch_bytes = C * C * 4
    # 2 double-buffered input windows + 2 double-buffered output windows + scratch,
    # with ~4 MiB slack for compiler-internal scratch.
    window_budget = max((vmem_limit - scratch_bytes - (4 << 20)) // 4,
                        C * 128 * itemsize)
    if hw_tile is None:
        hw_tile = _pick_hw_tile(HW_pad, C, itemsize, window_budget)
    assert HW_pad % hw_tile == 0 and hw_tile % 128 == 0
    n_hw = HW_pad // hw_tile

    gamma_arr = jnp.asarray(gamma, dtype=jnp.float32).reshape(1)

    out = pl.pallas_call(
        cam_kernel,
        out_shape=jax.ShapeDtypeStruct((N, C, HW_pad), x.dtype),
        grid_spec=pltpu.PrefetchScalarGridSpec(
            num_scalar_prefetch=0,
            grid=(N, 2, n_hw),
            in_specs=[
                pl.BlockSpec(memory_space=pltpu.MemorySpace.SMEM),       # gamma
                pl.BlockSpec((1, C, hw_tile), lambda n, p, h: (n, 0, h)),  # x tiles
            ],
            # Phase 0 parks the output window on tile 0 (seeded with x); phase 1
            # walks the tiles and writes each exactly once.
            out_specs=pl.BlockSpec((1, C, hw_tile), lambda n, p, h: (n, 0, h * p)),
            scratch_shapes=[pltpu.VMEM((C, C), jnp.float32)],
        ),
        compiler_params=pltpu.CompilerParams(
            dimension_semantics=("parallel", "arbitrary", "arbitrary"),
            vmem_limit_bytes=int(vmem_limit),
        ),
    )(gamma_arr, x)

    if HW_pad != HW:
        out = out[:, :, :HW]
    return out.reshape(N, C, H, W)


def _reference(x, gamma):
    # Pure-JAX reference matching the PyTorch CAM_Module forward exactly.
    N, C, H, W = x.shape
    q = x.reshape(N, C, H * W).astype(jnp.float32)
    energy = jnp.einsum("ncl,nml->ncm", q, q, precision=lax.Precision.HIGHEST)
    energy_new = jnp.max(energy, axis=-1, keepdims=True) - energy
    attention = jax.nn.softmax(energy_new, axis=-1)
    out = jnp.einsum("ncm,nml->ncl", attention, q, precision=lax.Precision.HIGHEST)
    return (gamma * out + q).reshape(N, C, H, W).astype(x.dtype)


if __name__ == "__main__":
    N, C, H, W = 2, 4, 16, 16

    key = jax.random.PRNGKey(0)
    k_x, k_g = jax.random.split(key)
    x = jax.random.normal(k_x, (N, C, H, W), dtype=jnp.float32)
    # gamma is a learnable scalar (initialized to 0 in the PyTorch module); use a
    # non-zero value so the attention path is actually exercised.
    gamma = 0.5 + 0.1 * jax.random.normal(k_g, (), dtype=jnp.float32)

    out = jax.block_until_ready(cam_module(x, gamma))
    ref = _reference(x, gamma)
    assert out.shape == (N, C, H, W)
    err = float(jnp.max(jnp.abs(out - ref)))
    # Tolerance covers MXU matmul precision differences vs the HIGHEST-precision ref.
    assert jnp.allclose(out, ref, rtol=2e-2, atol=2e-2), f"max abs err {err}"

    # gamma == 0 (PyTorch init) must reduce exactly to identity.
    out0 = jax.block_until_ready(cam_module(x, 0.0))
    assert jnp.allclose(out0, x, rtol=1e-5, atol=1e-5)

    print("KERNEL_OK")
</pallas_src>

<mosaic_0001>
module attributes {stable_mosaic.version = 11 : i64} {
  func.func @cam_kernel(%arg0: i32, %arg1: i32, %arg2: i32, %arg3: memref<1xf32, #tpu.memory_space<smem>>, %arg4: memref<1x4x256xf32, #tpu.memory_space<vmem>>, %arg5: memref<1x4x256xf32, #tpu.memory_space<vmem>>, %arg6: memref<4x4xf32, #tpu.memory_space<vmem>>) attributes {dimension_semantics = [#tpu.dimension_semantics<parallel>, #tpu.dimension_semantics<arbitrary>, #tpu.dimension_semantics<arbitrary>], iteration_bounds = array<i64: 2, 2, 1>, scalar_prefetch = 0 : i64, scratch_operands = 1 : i64, tpu.core_type = #tpu.core_type<tc>, window_params = [{transform_indices = @transform_0, window_bounds = array<i64: 1>}, {transform_indices = @transform_1, window_bounds = array<i64: 1, 4, 256>}, {transform_indices = @transform_2, window_bounds = array<i64: 1, 4, 256>}]} {
    %c0 = arith.constant 0 : index
    %c0_0 = arith.constant 0 : index
    %c0_1 = arith.constant 0 : index
    %0 = vector.load %arg4[%c0, %c0_0, %c0_1] : memref<1x4x256xf32, #tpu.memory_space<vmem>>, vector<1x4x256xf32>
    %1 = vector.shape_cast %0 : vector<1x4x256xf32> to vector<4x256xf32>
    %c0_i32 = arith.constant 0 : i32
    %2 = arith.cmpi eq, %arg1, %c0_i32 : i32
    %c0_i32_2 = arith.constant 0 : i32
    %3 = arith.cmpi eq, %arg2, %c0_i32_2 : i32
    %4 = arith.andi %2, %3 : i1
    %5 = arith.extui %4 : i1 to i32
    %c0_i32_3 = arith.constant 0 : i32
    %6 = arith.cmpi ne, %5, %c0_i32_3 : i32
    scf.if %6 {
      %cst = arith.constant 0.000000e+00 : f32
      %18 = vector.broadcast %cst : f32 to vector<4x4xf32>
      %c0_10 = arith.constant 0 : index
      %c0_11 = arith.constant 0 : index
      %19 = vector.load %arg6[%c0_10, %c0_11] : memref<4x4xf32, #tpu.memory_space<vmem>>, vector<4x4xf32>
      tpu.vector_store %arg6[%c0_10, %c0_11], %18 {strides = array<i32>} : memref<4x4xf32, #tpu.memory_space<vmem>>, vector<4x4xf32>,
      %c0_12 = arith.constant 0 : index
      %c0_13 = arith.constant 0 : index
      %c0_14 = arith.constant 0 : index
      %20 = vector.load %arg5[%c0_12, %c0_13, %c0_14] : memref<1x4x256xf32, #tpu.memory_space<vmem>>, vector<1x4x256xf32>
      %21 = vector.shape_cast %20 : vector<1x4x256xf32> to vector<4x256xf32>
      %22 = vector.shape_cast %1 : vector<4x256xf32> to vector<1x4x256xf32>
      tpu.vector_store %arg5[%c0_12, %c0_13, %c0_14], %22 {strides = array<i32>} : memref<1x4x256xf32, #tpu.memory_space<vmem>>, vector<1x4x256xf32>,
    } else {
    }
    %c0_i32_4 = arith.constant 0 : i32
    %7 = arith.cmpi eq, %arg1, %c0_i32_4 : i32
    %8 = arith.extui %7 : i1 to i32
    %c0_i32_5 = arith.constant 0 : i32
    %9 = arith.cmpi ne, %8, %c0_i32_5 : i32
    scf.if %9 {
      %c0_10 = arith.constant 0 : index
      %c0_11 = arith.constant 0 : index
      %18 = vector.load %arg6[%c0_10, %c0_11] : memref<4x4xf32, #tpu.memory_space<vmem>>, vector<4x4xf32>
      %cst = arith.constant dense<0.000000e+00> : vector<4x4xf32>
      %19 = tpu.matmul %1, %1, %cst {dimension_numbers = #tpu.dot_dimension_numbers<[1], [1], [0], [0], [0, 0, 1, 0], [], []>} : vector<4x256xf32>, vector<4x256xf32>, vector<4x4xf32> -> vector<4x4xf32>
      %20 = arith.addf %18, %19 : vector<4x4xf32>
      %c0_12 = arith.constant 0 : index
      %c0_13 = arith.constant 0 : index
      %21 = vector.load %arg6[%c0_12, %c0_13] : memref<4x4xf32, #tpu.memory_space<vmem>>, vector<4x4xf32>
      tpu.vector_store %arg6[%c0_12, %c0_13], %20 {strides = array<i32>} : memref<4x4xf32, #tpu.memory_space<vmem>>, vector<4x4xf32>,
    } else {
    }
    %c1_i32 = arith.constant 1 : i32
    %10 = arith.cmpi eq, %arg1, %c1_i32 : i32
    %c0_i32_6 = arith.constant 0 : i32
    %11 = arith.cmpi eq, %arg2, %c0_i32_6 : i32
    %12 = arith.andi %10, %11 : i1
    %13 = arith.extui %12 : i1 to i32
    %c0_i32_7 = arith.constant 0 : i32
    %14 = arith.cmpi ne, %13, %c0_i32_7 : i32
    scf.if %14 {
      %c0_10 = arith.constant 0 : index
      %c0_11 = arith.constant 0 : index
      %18 = vector.load %arg6[%c0_10, %c0_11] : memref<4x4xf32, #tpu.memory_space<vmem>>, vector<4x4xf32>
      %cst = arith.constant dense<0xFF800000> : vector<4xf32>
      %19 = vector.multi_reduction <maximumf>, %18, %cst [1] : vector<4x4xf32> to vector<4xf32>
      %20 = vector.shape_cast %19 : vector<4xf32> to vector<4x1xf32>
      %21 = vector.broadcast %20 : vector<4x1xf32> to vector<4x4xf32>
      %22 = arith.subf %21, %18 : vector<4x4xf32>
      %cst_12 = arith.constant dense<0xFF800000> : vector<4xf32>
      %23 = vector.multi_reduction <maximumf>, %22, %cst_12 [1] : vector<4x4xf32> to vector<4xf32>
      %24 = vector.shape_cast %23 : vector<4xf32> to vector<4x1xf32>
      %25 = vector.broadcast %24 : vector<4x1xf32> to vector<4x4xf32>
      %26 = arith.subf %22, %25 : vector<4x4xf32>
      %27 = math.exp %26 : vector<4x4xf32>
      %cst_13 = arith.constant dense<0.000000e+00> : vector<4xf32>
      %28 = vector.multi_reduction <add>, %27, %cst_13 [1] : vector<4x4xf32> to vector<4xf32>
      %29 = vector.shape_cast %28 : vector<4xf32> to vector<4x1xf32>
      %30 = tpu.reciprocal %29 {approx = true} : vector<4x1xf32> -> vector<4x1xf32>
      %c0_14 = arith.constant 0 : index
      %31 = memref.load %arg3[%c0_14] : memref<1xf32, #tpu.memory_space<smem>>
      %32 = vector.broadcast %30 : vector<4x1xf32> to vector<4x4xf32>
      %33 = arith.mulf %27, %32 : vector<4x4xf32>
      %34 = vector.broadcast %31 : f32 to vector<4x4xf32>
      %35 = arith.mulf %34, %33 : vector<4x4xf32>
      %c0_15 = arith.constant 0 : index
      %c0_16 = arith.constant 0 : index
      %36 = vector.load %arg6[%c0_15, %c0_16] : memref<4x4xf32, #tpu.memory_space<vmem>>, vector<4x4xf32>
      tpu.vector_store %arg6[%c0_15, %c0_16], %35 {strides = array<i32>} : memref<4x4xf32, #tpu.memory_space<vmem>>, vector<4x4xf32>,
    } else {
    }
    %c1_i32_8 = arith.constant 1 : i32
    %15 = arith.cmpi eq, %arg1, %c1_i32_8 : i32
    %16 = arith.extui %15 : i1 to i32
    %c0_i32_9 = arith.constant 0 : i32
    %17 = arith.cmpi ne, %16, %c0_i32_9 : i32
    scf.if %17 {
      %c0_10 = arith.constant 0 : index
      %c0_11 = arith.constant 0 : index
      %18 = vector.load %arg6[%c0_10, %c0_11] : memref<4x4xf32, #tpu.memory_space<vmem>>, vector<4x4xf32>
      %cst = arith.constant dense<0.000000e+00> : vector<4x256xf32>
      %19 = tpu.matmul %18, %1, %cst {dimension_numbers = #tpu.dot_dimension_numbers<[1], [0], [0], [1], [0, 0, 1, 1], [], []>} : vector<4x4xf32>, vector<4x256xf32>, vector<4x256xf32> -> vector<4x256xf32>
      %20 = arith.addf %19, %1 : vector<4x256xf32>
      %c0_12 = arith.constant 0 : index
      %c0_13 = arith.constant 0 : index
      %c0_14 = arith.constant 0 : index
      %21 = vector.load %arg5[%c0_12, %c0_13, %c0_14] : memref<1x4x256xf32, #tpu.memory_space<vmem>>, vector<1x4x256xf32>
      %22 = vector.shape_cast %21 : vector<1x4x256xf32> to vector<4x256xf32>
      %23 = vector.shape_cast %20 : vector<4x256xf32> to vector<1x4x256xf32>
      tpu.vector_store %arg5[%c0_12, %c0_13, %c0_14], %23 {strides = array<i32>} : memref<1x4x256xf32, #tpu.memory_space<vmem>>, vector<1x4x256xf32>,
    } else {
    }
    return
  }
  func.func @transform_0(%arg0: i32, %arg1: i32, %arg2: i32) -> i32 {
    %c0_i32 = arith.constant 0 : i32
    %c0_i32_0 = arith.constant 0 : i32
    return %c0_i32 : i32
  }
  func.func @transform_1(%arg0: i32, %arg1: i32, %arg2: i32) -> (i32, i32, i32) {
    %c0_i32 = arith.constant 0 : i32
    %c0_i32_0 = arith.constant 0 : i32
    return %arg0, %c0_i32, %arg2 : i32, i32, i32
  }
  func.func @transform_2(%arg0: i32, %arg1: i32, %arg2: i32) -> (i32, i32, i32) {
    %0 = arith.muli %arg2, %arg1 : i32
    %c0_i32 = arith.constant 0 : i32
    %c0_i32_0 = arith.constant 0 : i32
    return %arg0, %c0_i32, %0 : i32, i32, i32
  }
}

</mosaic_0001>

<bundles_post_ra>
// kernel: tpu_custom_call.1
= control target key start
LH: loop header
LB: loop body
LE: loop exit
PB: predicated region body
PF: predicated region fallthrough
CT: control target
= control target key end

     0   :  { %s885_s0 = inlined_call_operand.<no memory space> [shape: f32[1], index: 0, kind: input, shape index: {}]   ;;  %s886_s1 = inlined_call_operand.hbm [shape: f32[2,4,256], index: 1, kind: input, shape index: {}]   ;;  %s887_s2 = inlined_call_operand.hbm [shape: f32[2,4,256], index: 2, kind: output, shape index: {}]  }
   0x1   :  { %7 = sst [smem:[#allocation3]] %s885_s0 }
   0x2   :  { %8 = vsyncpa [#allocation5], 0 }
   0x3   :  { %10 = vsyncpa [#allocation5 + $0x1], 0 }
   0x4   :  { %11 = vsyncpa [#allocation6], 0 }
   0x5   :  { %13 = vsyncpa [#allocation6 + $0x1], 0  ;;  %s724_s11 = smov 0   ;;  %s726_s12 = smov 0  }
   0x6   :  { %s728_s13 = smov 0   ;;  %s730_s14 = smov 0  }
   0x7   :  { %s732_s15 = smov 0   ;;  %s734_s16 = smov 0  }
   0x8   :  { %s736_s17 = smov 0   ;;  %s738_s18 = smov 0  }
   0x9 LB: > { %s465_s0 = sadd.s32 4294967295, %s703_s18   ;;  %s466_s19 = sadd.s32 4294967294, %s703_s18   ;;  %s703_s18 = sphi %s738_s18, %s19_s18   ;;  %s699_s17 = sphi %s736_s17, %s898_s17   ;;  %s695_s16 = sphi %s734_s16, %s897_s16   ;;  %s691_s15 = sphi %s732_s15, %s896_s15   ;;  %s687_s14 = sphi %s730_s14, %s895_s14   ;;  %s683_s13 = sphi %s728_s13, %s894_s13   ;;  %s679_s12 = sphi %s726_s12, %s893_s12   ;;  %s675_s11 = sphi %s724_s11, %s892_s11  }
   0xa   : > { %s34_s20 = sadd.s32 1, %s695_s16  ;;  %s38_s21 = sadd.s32 1, %s699_s17 }
   0xb   : > { %p36_p0 = scmp.ge.s32.totalorder %s34_s20, 2  ;;  %s68_s22 = sadd.s32 1, %s683_s13 }
   0xc   : > { %p75_p1 = scmp.ne.s32.totalorder %s683_s13, %s679_s12  ;;  %p76_p2 = scmp.eq.s32.totalorder %s703_s18, 0 }
   0xd   : > { %s900_s20 = smov (%p36_p0, %s34_s20), 0  ;;  %s902_s21 = smov (!%p36_p0, %s38_s21), %s699_s17 }
   0xe   : > { %p775_p3 = por %p76_p2, %p75_p1  ;;  %p81_p4 = scmp.ne.s32.totalorder %s679_s12, %s675_s11 }
   0xf   : > { %p40_p5 = scmp.ge.s32.totalorder %s902_s21, 2  ;;  %p82_p6 = scmp.eq.s32.totalorder %s465_s0, 0 }
  0x10   : > { %p109_p7 = scmp.eq.s32.totalorder %s465_s0, 3  ;;  %p115_p8 = scmp.eq.s32.totalorder %s466_s19, 3 }
  0x11   : > { %s904_s21 = smov (%p40_p5, %s902_s21), 0  ;;  %p783_p9 = por %p82_p6, %p81_p4 }
  0x12   : > { %p787_p10 = por %p109_p7, %p75_p1  ;;  %s63_s26 = ssub.s32 %s699_s17, %s904_s21 }
  0x13   : > { %p793_p11 = por %p115_p8, %p81_p4  ;;  %p66_p12 = scmp.eq.s32.totalorder %s63_s26, 0 }
  0x14   : > { %p504_p13 = scmp.lt.s32.totalorder %s703_s18, 4  ;;  %s138_s28 = sand.u32 1, %s683_s13  }
  0x15   : > { %s800_s29 = scalar_select %p66_p12, %s683_s13, %s68_s22  }
  0x16   : > { %s469_s30 = sshll.u32 %s138_s28, 3  ;;  %s488_s3 = sshll.u32 %s699_s17, 3 }
  0x17   : > { %s149_s6 = scalar_lea.hbm %s886_s1, %s488_s3  ;;  %s142_s7 = scalar_lea.vmem [#allocation4], %s469_s30 }
  0x18   : > { %s153_s8 = sshll.u32 %s142_s7, 4  ;;  %s151_s9 = sshll.u32 %s149_s6, 4  ;;  %s154_s8 = int_to_ptr.vmem [resolvable:$true] %s153_s8  ;;  %s152_s9 = int_to_ptr.hbm [resolvable:$true] %s151_s9 }
  0x19   : > { %p497_p0 = pnand %p504_p13, %p775_p3  ;;  %p472_p1 = scmp.ge.s32.totalorder %s703_s18, 1 }
  0x1a   : > { %p158_p2 = scmp.lt.s32.totalorder %s703_s18, 5  ;;  %s139_s10 = scalar_lea.sflag [#allocation5], %s138_s28 }
  0x1b   : > { %499 = dma.hbm_to_vmem [thread:$0]  (!%p497_p0), %s152_s9, 128, %s154_s8, %s139_s10  }
  0x1c   : > { %p159_p4 = pnand %p472_p1, %p158_p2 }
  0x1d   : > { %s811_s0 = sand.u32 (!%p159_p4), 1, %s679_s12  }
  0x1e   : > { %162 = sbr.rel (%p159_p4) target bundleno = 746 (0x2ea), region = 28  ;;  %s473_s19 = sshll.u32 (!%p159_p4), %s811_s0, 3 }
  0x1f   : > { %s165_s22 = scalar_lea.sflag (!%p159_p4), [#allocation5], %s811_s0  ;;  %s168_s26 = scalar_lea.vmem (!%p159_p4), [#allocation4], %s473_s19 }
  0x23   : > { %666 = dma.done.wait (%p783_p9), %s165_s22, 128  }
  0x24   : > { %668 = vsyncadd (%p783_p9), %s165_s22, 4294967168  ;;  %p194_p3 = scmp.eq.s32.totalorder %s687_s14, 0  ;;  %v820_v0 = vld [vmem:[%s168_s26] sm:$0xff]  ;;  %s822_s23 = scalar_lea.vmem [#allocation7], %s473_s19 }
  0x25   : > { %vm200_vm0 = vcmask (%p194_p3), 27648   ;;  %202 = vst [vmem:[%s822_s23] sm:$0xff] (%p194_p3), %v820_v0  ;;  %v705_v1 = vmov (%p194_p3), 0.0  }
  0x26   : > { %199 = sbr.rel (!%p194_p3) target bundleno = 43 (0x2b), region = 36  ;;  %201 = vst.msk [vmem:[#allocation2] sm:$0xf] (%p194_p3), %vm200_vm0, %v705_v1 }
  0x2b PF: > { %p476_p5 = scmp.ne.s32.totalorder %s687_s14, 0 }
  0x2d   : > { %205 = sbr.rel (%p476_p5) target bundleno = 200 (0xc8), region = 40 }
  0x32   : > { %208 = vst [vmem:[#allocation1] ss:$2 sm:$0xff] %v820_v0  ;;  %v206_v7 = vld [vmem:[#allocation2] sm:$0xf]  ;;  %vm259_vm1 = vcmask 27648  }
  0x39   : > { %v209_v2 = vld.sshfl [vmem:[#allocation1] sm:$0xff pattern:$0x75316420]  ;;  %v210_v3 = vld.sshfl [vmem:[#allocation1 + $0x8] sm:$0xff pattern:$0x75316420] }
  0x3a   : > { %213 = vst [vmem:[#allocation1] ss:$2 sm:$0xff] %v820_v0 }
  0x41   : > { %v214_v4 = vld.sshfl [vmem:[#allocation1] sm:$0xff pattern:$0x75316420]  ;;  %v215_v5 = vld.sshfl [vmem:[#allocation1 + $0x8] sm:$0xff pattern:$0x75316420] }
  0x42   : > { %233 = vmatpush.xpose.msra.mxu0 %v214_v4  ;;  %253 = vmatpush.xpose.msra.mxu1 %v215_v5 }
  0x45   : > { %234 = vmatmul.f32.vlgmr.msra.gmra.mxu0 %v209_v2  ;;  %254 = vmatmul.f32.vlgmr.msra.gmra.mxu1 %v210_v3 }
  0xc2   : > { %v235_v6 = vpop.f32.mrf.mxu0  ;;  %v255_v8 = vpop.f32.mrf.mxu1 }
  0xc3   : > { %v256_v9 = vadd.f32 %v255_v8, %v235_v6 }
  0xc5   : > { %v258_v10 = vadd.f32 %v256_v9, %v206_v7 }
  0xc7   : > { %260 = vst.msk [vmem:[#allocation2] sm:$0xf] %vm259_vm1, %v258_v10 }
  0xc8 PF: > { %p261_p6 = scmp.eq.s32.totalorder %s687_s14, 1 }
  0xc9   : > { %vm267_vm2 = vcmask (%p261_p6), 27648   ;;  %s282_s24 = sld [smem:[#allocation3]] (%p261_p6) }
  0xca   : > { %265 = sbr.rel (!%p261_p6) target bundleno = 583 (0x247), region = 44 }
  0xce   : > { %v266_v11 = vld [vmem:[#allocation2] sm:$0xf] (%p261_p6) }
  0xcf   : > { %v268_v12 = vsel %vm267_vm2, %v266_v11, -inf  ;;  %v284_v23 = vstv %s282_s24 }
  0xd0   : > { %269 = vmax.xlane.f32.xlu0 %v268_v12 }
 0x143   : > { %v270_v13 = vpop.xlane.xlu0 %269 }
 0x144   : > { %v271_v14 = vsub.f32 %v270_v13, %v266_v11 }
 0x146   : > { %v272_v15 = vsel %vm267_vm2, %v271_v14, -inf }
 0x147   : > { %273 = vmax.xlane.f32.xlu0 %v272_v15 }
 0x1ba   : > { %v274_v16 = vpop.xlane.xlu0 %273 }
 0x1bb   : > { %v275_v17 = vsub.f32 %v271_v14, %v274_v16 }
 0x1bd   : > { %v276_v18 = vmul.f32 1.442695, %v275_v17 }
 0x1bf   : > { %571 = vpow2.f32 %v276_v18 }
 0x1c5   : > { %v572_v19 = vpop.eup %571 }
 0x1c6   : > { %v278_v20 = vsel %vm267_vm2, %v572_v19, 0.0 }
 0x1c7   : > { %279 = vadd.xlane.f32.xlu1 %v278_v20 }
 0x23a   : > { %v280_v21 = vpop.xlane.xlu1 %279 }
 0x23b   : > { %573 = vrcp.f32 %v280_v21 }
 0x241   : > { %v574_v22 = vpop.eup %573 }
 0x242   : > { %v283_v24 = vmul.f32 %v574_v22, %v572_v19 }
 0x244   : > { %v285_v25 = vmul.f32 %v284_v23, %v283_v24 }
 0x246   : > { %286 = vst.msk [vmem:[#allocation2] sm:$0xf] %vm267_vm2, %v285_v25 }
 0x247 PF: > { %p478_p7 = scmp.ne.s32.totalorder %s687_s14, 1 }
 0x249   : > { %289 = sbr.rel (%p478_p7) target bundleno = 731 (0x2db), region = 48 }
 0x24e   : > { %292 = vst [vmem:[#allocation1] ss:$2 sm:$0xff] %v820_v0  ;;  %vm304_vm3 = vcmask 1043456   ;;  %v290_v26 = vld [vmem:[#allocation2] sm:$0xf]  ;;  %vm300_vm4 = vcmask 31744  }
 0x255   : > { %v294_v27 = vld.sshfl [vmem:[#allocation1 + $0x8] sm:$0xff pattern:$0x75316420]  ;;  %v293_v28 = vld.sshfl [vmem:[#allocation1] sm:$0xff pattern:$0x75316420] }
 0x256   : > { %481 = vmatpush.msk.msra.mxu1 %vm304_vm3, %v294_v27  ;;  %295 = vst [vmem:[#allocation1] ss:$2 sm:$0xff] %v820_v0  ;;  %479 = vmatpush.msk.msra.mxu0 %vm304_vm3, %v293_v28 }
 0x257   : > { %482 = vmatmul.msk.f32.vlgmr.msra.gmra.mxu1 %vm300_vm4, %v290_v26  ;;  %480 = vmatmul.msk.f32.vlgmr.msra.gmra.mxu0 %vm300_vm4, %v290_v26 }
 0x25d   : > { %v297_v29 = vld.sshfl [vmem:[#allocation1 + $0x8] sm:$0xff pattern:$0x75316420]  ;;  %v296_v30 = vld.sshfl [vmem:[#allocation1] sm:$0xff pattern:$0x75316420] }
 0x2d4   : > { %v346_v31 = vpop.f32.mrf.mxu1  ;;  %v326_v32 = vpop.f32.mrf.mxu0 }
 0x2d5   : > { %v347_v33 = vadd.f32 %v346_v31, %v297_v29  ;;  %v327_v34 = vadd.f32 %v326_v32, %v296_v30 }
 0x2d7   : > { %v351_v35 = vrot.slane %v347_v33, 4 }
 0x2d9   : > { %v352_v36 = vsel %vm304_vm3, %v327_v34, %v351_v35 }
 0x2da   : > { %354 = vst [vmem:[%s822_s23] sm:$0xff] %v352_v36 }
 0x2db PF: > { %s491_s14 = sshll.u32 %s691_s15, 3  ;;  %s372_s4 = sshll.u32 %s822_s23, 4  ;;  %s373_s4 = int_to_ptr.vmem [resolvable:$true] %s372_s4 }
 0x2dc   : > { %s370_s3 = scalar_lea.hbm %s887_s2, %s491_s14  ;;  %s356_s6 = scalar_lea.sflag [#allocation6], %s811_s0 }
 0x2dd   : > { %s374_s5 = sshll.u32 %s370_s3, 4  ;;  %s625_s15 = scalar_lea.hbm %s887_s2, 16  ;;  %s375_s5 = int_to_ptr.hbm [resolvable:$true] %s374_s5 }
 0x2de   : > { %s619_s7 = sshra.s32 %s375_s5, 4  ;;  %s620_s7 = int_to_ptr.hbm [resolvable:$true] %s619_s7 }
 0x2df   : > { %s621_s8 = scalar_lea.hbm %s620_s7, 8  ;;  %p626_p13 = scmp.lt.s32.totalorder %s620_s7, %s887_s2 }
 0x2e0   : > { %p622_p8 = scmp.ne.s32.totalorder %s620_s7, %s621_s8  ;;  %p627_p0 = scmp.lt.s32.totalorder %s625_s15, %s621_s8 }
 0x2e2   : > { %p623_p9 = pnand %p622_p8, %p787_p10  ;;  %p628_p1 = por %p627_p0, %p626_p13 }
 0x2e4   : > { %p624_p12 = pneg %p623_p9 }
 0x2e6   : > { %p629_p2 = pnand %p628_p1, %p624_p12 }
 0x2e8   : > { %632 = shalt.err (!%p629_p2)
}
 0x2e9   : > { %494 = dma.vmem_to_hbm [thread:$0]  (%p787_p10), %s373_s4, 128, %s375_s5, %s356_s6  }
 0x2ea PF: > { %p505_p4 = scmp.ge.s32.totalorder %s703_s18, 2  ;;  %s386_s0 = sand.u32 1, %s675_s11  }
 0x2eb   : > { %s387_s26 = scalar_lea.sflag [#allocation6], %s386_s0 }
 0x2ec   : > { %p501_p3 = pnand %p505_p4, %p793_p11 }
 0x2ee   : > { %p502_p5 = pneg %p501_p3 }
 0x2f0   : > { %670 = dma.done.wait (%p502_p5), %s387_s26, 128  }
 0x2f1   : > { %672 = vsyncadd (%p502_p5), %s387_s26, 4294967168  ;;  %s19_s18 = sadd.s32 1, %s703_s18   ;;  %s892_s11 = smov %s679_s12 }
 0x2f2   : > { %p16_p6 = scmp.ge.s32.totalorder %s19_s18, 6   ;;  %s893_s12 = smov %s683_s13 }
 0x2f3   : > { %s894_s13 = smov %s800_s29  ;;  %s895_s14 = smov %s695_s16 }
 0x2f4   : > { %s896_s15 = smov %s699_s17  ;;  %s897_s16 = smov %s900_s20 }
 0x2f5   : > { %s898_s17 = smov %s904_s21  ;;  %18 = sbr.rel (!%p16_p6) target bundleno = 9 (0x9), region = 89 }
 0x2fa   :  { %393 = vsyncpa [#allocation5], 1 }
 0x2fb   :  { %395 = vsyncpa [#allocation5 + $0x1], 1 }
 0x2fc   :  { %396 = vsyncpa [#allocation6], 1 }
 0x2fd   :  { %398 = vsyncpa [#allocation6 + $0x1], 1 }

</bundles_post_ra>
